<compile_context>
chip_gen: v5e
topology: v5e:2x2
jax: 0.10.0
libtpu: 0.0.40
codegen_flags: <defaults>
</compile_context>

<pallas_src>
import functools

import jax
import jax.numpy as jnp
from jax.experimental import pallas as pl
from jax.experimental.pallas import tpu as pltpu


def _shift_p1(a, axis):
    """b[..., i, ...] = a[..., i-1, ...] along `axis`; zero-filled at the low edge."""
    zshape = list(a.shape)
    zshape[axis] = 1
    zero = jnp.zeros(zshape, a.dtype)
    body = jax.lax.slice_in_dim(a, 0, a.shape[axis] - 1, axis=axis)
    return jnp.concatenate([zero, body], axis=axis)


def _shift_m1(a, axis):
    """b[..., i, ...] = a[..., i+1, ...] along `axis`; zero-filled at the high edge."""
    zshape = list(a.shape)
    zshape[axis] = 1
    zero = jnp.zeros(zshape, a.dtype)
    body = jax.lax.slice_in_dim(a, 1, a.shape[axis], axis=axis)
    return jnp.concatenate([body, zero], axis=axis)


def sobelxy_kernel(x_ref, o_ref, *, H):
    # x_ref / o_ref: (BR, W) where BR = BN * H rows of BN stacked single-channel images.
    x = x_ref[...].astype(jnp.float32)
    BR, W = x.shape

    # ---- horizontal (lane) pass: zero-padded column neighbours ---------------------
    # Kx = [1,2,1]^T (x) [-1,0,1]   Ky = [1,0,-1]^T (x) [1,2,1]
    xl = _shift_p1(x, axis=1)                 # x[:, j-1]  (0 at j == 0)
    xr = _shift_m1(x, axis=1)                 # x[:, j+1]  (0 at j == W-1)
    d = xr - xl                               # correlate with [-1, 0, 1]
    s = (xl + xr) + (x + x)                   # correlate with [ 1, 2, 1]

    # ---- vertical (sublane) pass: zero-padded row neighbours -----------------------
    # Images are stacked along the row axis; rows 0 / H-1 of each image must see the
    # zero padding, not the neighbouring image -> mask with the row-within-image index.
    row = jax.lax.broadcasted_iota(jnp.int32, (BR, W), 0) % H
    top = row == 0
    bot = row == H - 1
    du = jnp.where(top, 0.0, _shift_p1(d, axis=0))   # d[i-1, :]
    dd = jnp.where(bot, 0.0, _shift_m1(d, axis=0))   # d[i+1, :]
    su = jnp.where(top, 0.0, _shift_p1(s, axis=0))   # s[i-1, :]
    sd = jnp.where(bot, 0.0, _shift_m1(s, axis=0))   # s[i+1, :]

    sobelx = (du + dd) + (d + d)              # vertical [1, 2, 1] applied to d
    sobely = su - sd                          # vertical [1, 0, -1] applied to s

    o_ref[...] = (jnp.abs(sobelx) + jnp.abs(sobely)).astype(o_ref.dtype)


def sobelxy(x, *, vmem_block_bytes=4 * 1024 * 1024):
    """x: (N, 1, H, W) float32 -> (N, 1, H, W) float32, matching the PyTorch module."""
    N, C, H, W = x.shape
    assert C == 1, "Sobelxy uses (1,1,3,3) weights; input must be single-channel."

    # Stack images along the row axis; no host-side padding (padding is fused in-kernel).
    x2d = x.reshape(N * H, W)

    # Images per grid step: large enough to amortize per-step pipeline overhead, small
    # enough that double-buffered in+out blocks stay well under the scoped-VMEM limit on
    # every generation (including v7x's 64 MiB VMEM).
    elems_budget = max(1, vmem_block_bytes // x.dtype.itemsize)
    BN = max(1, min(N, elems_budget // max(1, H * W)))
    if (BN * H) % 8 != 0 and BN != N:
        BN = N  # block == full array is always a legal block shape
    BR = BN * H
    # TODO(synk): row-tile with a 2-row halo for single images larger than the VMEM budget.

    out2d = pl.pallas_call(
        functools.partial(sobelxy_kernel, H=H),
        out_shape=jax.ShapeDtypeStruct((N * H, W), x.dtype),
        grid=(pl.cdiv(N, BN),),
        in_specs=[pl.BlockSpec((BR, W), lambda i: (i, 0))],
        out_specs=pl.BlockSpec((BR, W), lambda i: (i, 0)),
        compiler_params=pltpu.CompilerParams(
            dimension_semantics=("parallel",),
        ),
    )(x2d)

    return out2d.reshape(N, 1, H, W)


def _reference(x):
    """Pure-JAX direct 9-tap reference for a correctness spot-check."""
    N, C, H, W = x.shape
    kernelx = jnp.array([[-1., 0., 1.], [-2., 0., 2.], [-1., 0., 1.]], jnp.float32)
    kernely = jnp.array([[1., 2., 1.], [0., 0., 0.], [-1., -2., -1.]], jnp.float32)
    xp = jnp.pad(x[:, 0], ((0, 0), (1, 1), (1, 1)))
    sx = jnp.zeros((N, H, W), jnp.float32)
    sy = jnp.zeros((N, H, W), jnp.float32)
    for ki in range(3):
        for kj in range(3):
            win = xp[:, ki:ki + H, kj:kj + W]
            sx = sx + kernelx[ki, kj] * win
            sy = sy + kernely[ki, kj] * win
    return (jnp.abs(sx) + jnp.abs(sy))[:, None]


if __name__ == "__main__":
    key = jax.random.PRNGKey(0)
    x = jax.random.normal(key, (2, 1, 16, 16), dtype=jnp.float32)

    y = sobelxy(x)
    y = jax.block_until_ready(y)

    y_ref = _reference(x)
    assert y.shape == (2, 1, 16, 16)
    assert jnp.allclose(y, y_ref, atol=1e-5, rtol=1e-5)

    print("KERNEL_OK")
</pallas_src>

<mosaic_0001>
module attributes {stable_mosaic.version = 11 : i64} {
  func.func @sobelxy_kernel(%arg0: i32, %arg1: memref<32x16xf32, #tpu.memory_space<vmem>>, %arg2: memref<32x16xf32, #tpu.memory_space<vmem>>) attributes {dimension_semantics = [#tpu.dimension_semantics<parallel>], iteration_bounds = array<i64: 1>, scalar_prefetch = 0 : i64, scratch_operands = 0 : i64, tpu.core_type = #tpu.core_type<tc>, window_params = [{transform_indices = @transform_0, window_bounds = array<i64: 32, 16>}, {transform_indices = @transform_1, window_bounds = array<i64: 32, 16>}]} {
    %c0 = arith.constant 0 : index
    %c0_0 = arith.constant 0 : index
    %0 = vector.load %arg1[%c0, %c0_0] : memref<32x16xf32, #tpu.memory_space<vmem>>, vector<32x16xf32>
    %cst = arith.constant 0.000000e+00 : f32
    %1 = vector.broadcast %cst : f32 to vector<32x1xf32>
    %2 = vector.extract_strided_slice %0 {offsets = [0, 0], sizes = [32, 15], strides = [1, 1]} : vector<32x16xf32> to vector<32x15xf32>
    %3 = tpu.concatenate %1, %2 in 1 : vector<32x1xf32>, vector<32x15xf32> -> vector<32x16xf32>
    %cst_1 = arith.constant 0.000000e+00 : f32
    %4 = vector.broadcast %cst_1 : f32 to vector<32x1xf32>
    %5 = vector.extract_strided_slice %0 {offsets = [0, 1], sizes = [32, 15], strides = [1, 1]} : vector<32x16xf32> to vector<32x15xf32>
    %6 = tpu.concatenate %5, %4 in 1 : vector<32x15xf32>, vector<32x1xf32> -> vector<32x16xf32>
    %7 = arith.subf %6, %3 : vector<32x16xf32>
    %8 = arith.addf %3, %6 : vector<32x16xf32>
    %9 = arith.addf %0, %0 : vector<32x16xf32>
    %10 = arith.addf %8, %9 : vector<32x16xf32>
    %11 = tpu.iota {dimensions = array<i32: 0>} : vector<32x16xi32>
    %c16_i32 = arith.constant 16 : i32
    %c0_i32 = arith.constant 0 : i32
    %12 = arith.cmpi eq, %c16_i32, %c0_i32 : i32
    %c1_i32 = arith.constant 1 : i32
    %13 = arith.select %12, %c1_i32, %c16_i32 : i32
    %14 = vector.broadcast %13 : i32 to vector<32x16xi32>
    %15 = arith.remsi %11, %14 : vector<32x16xi32>
    %c0_i32_2 = arith.constant 0 : i32
    %16 = vector.broadcast %c0_i32_2 : i32 to vector<32x16xi32>
    %17 = arith.cmpi ne, %15, %16 : vector<32x16xi32>
    %c0_i32_3 = arith.constant 0 : i32
    %18 = vector.broadcast %c0_i32_3 : i32 to vector<32x16xi32>
    %19 = arith.cmpi slt, %15, %18 : vector<32x16xi32>
    %c0_i32_4 = arith.constant 0 : i32
    %20 = arith.cmpi slt, %13, %c0_i32_4 : i32
    %21 = vector.broadcast %20 : i1 to vector<32x16xi1>
    %22 = vector.broadcast %21 : vector<32x16xi1> to vector<32x16xi1>
    %23 = arith.xori %19, %22 : vector<32x16xi1>
    %24 = arith.andi %23, %17 : vector<32x16xi1>
    %25 = vector.broadcast %13 : i32 to vector<32x16xi32>
    %26 = arith.addi %15, %25 : vector<32x16xi32>
    %27 = arith.select %24, %26, %15 : vector<32x16xi1>, vector<32x16xi32>
    %c0_i32_5 = arith.constant 0 : i32
    %28 = vector.broadcast %c0_i32_5 : i32 to vector<32x16xi32>
    %29 = arith.cmpi eq, %27, %28 : vector<32x16xi32>
    %c15_i32 = arith.constant 15 : i32
    %30 = vector.broadcast %c15_i32 : i32 to vector<32x16xi32>
    %31 = arith.cmpi eq, %27, %30 : vector<32x16xi32>
    %cst_6 = arith.constant 0.000000e+00 : f32
    %32 = vector.broadcast %cst_6 : f32 to vector<1x16xf32>
    %33 = vector.extract_strided_slice %7 {offsets = [0, 0], sizes = [31, 16], strides = [1, 1]} : vector<32x16xf32> to vector<31x16xf32>
    %34 = tpu.concatenate %32, %33 in 0 : vector<1x16xf32>, vector<31x16xf32> -> vector<32x16xf32>
    %cst_7 = arith.constant 0.000000e+00 : f32
    %35 = vector.broadcast %cst_7 : f32 to vector<32x16xf32>
    %36 = arith.select %29, %35, %34 : vector<32x16xi1>, vector<32x16xf32>
    %cst_8 = arith.constant 0.000000e+00 : f32
    %37 = vector.broadcast %cst_8 : f32 to vector<1x16xf32>
    %38 = vector.extract_strided_slice %7 {offsets = [1, 0], sizes = [31, 16], strides = [1, 1]} : vector<32x16xf32> to vector<31x16xf32>
    %39 = tpu.concatenate %38, %37 in 0 : vector<31x16xf32>, vector<1x16xf32> -> vector<32x16xf32>
    %cst_9 = arith.constant 0.000000e+00 : f32
    %40 = vector.broadcast %cst_9 : f32 to vector<32x16xf32>
    %41 = arith.select %31, %40, %39 : vector<32x16xi1>, vector<32x16xf32>
    %cst_10 = arith.constant 0.000000e+00 : f32
    %42 = vector.broadcast %cst_10 : f32 to vector<1x16xf32>
    %43 = vector.extract_strided_slice %10 {offsets = [0, 0], sizes = [31, 16], strides = [1, 1]} : vector<32x16xf32> to vector<31x16xf32>
    %44 = tpu.concatenate %42, %43 in 0 : vector<1x16xf32>, vector<31x16xf32> -> vector<32x16xf32>
    %cst_11 = arith.constant 0.000000e+00 : f32
    %45 = vector.broadcast %cst_11 : f32 to vector<32x16xf32>
    %46 = arith.select %29, %45, %44 : vector<32x16xi1>, vector<32x16xf32>
    %cst_12 = arith.constant 0.000000e+00 : f32
    %47 = vector.broadcast %cst_12 : f32 to vector<1x16xf32>
    %48 = vector.extract_strided_slice %10 {offsets = [1, 0], sizes = [31, 16], strides = [1, 1]} : vector<32x16xf32> to vector<31x16xf32>
    %49 = tpu.concatenate %48, %47 in 0 : vector<31x16xf32>, vector<1x16xf32> -> vector<32x16xf32>
    %cst_13 = arith.constant 0.000000e+00 : f32
    %50 = vector.broadcast %cst_13 : f32 to vector<32x16xf32>
    %51 = arith.select %31, %50, %49 : vector<32x16xi1>, vector<32x16xf32>
    %52 = arith.addf %36, %41 : vector<32x16xf32>
    %53 = arith.addf %7, %7 : vector<32x16xf32>
    %54 = arith.addf %52, %53 : vector<32x16xf32>
    %55 = arith.subf %46, %51 : vector<32x16xf32>
    %56 = math.absf %54 : vector<32x16xf32>
    %57 = math.absf %55 : vector<32x16xf32>
    %58 = arith.addf %56, %57 : vector<32x16xf32>
    %c0_14 = arith.constant 0 : index
    %c0_15 = arith.constant 0 : index
    %59 = vector.load %arg2[%c0_14, %c0_15] : memref<32x16xf32, #tpu.memory_space<vmem>>, vector<32x16xf32>
    tpu.vector_store %arg2[%c0_14, %c0_15], %58 {strides = array<i32>} : memref<32x16xf32, #tpu.memory_space<vmem>>, vector<32x16xf32>,
    return
  }
  func.func @transform_0(%arg0: i32) -> (i32, i32) {
    %c0_i32 = arith.constant 0 : i32
    %c0_i32_0 = arith.constant 0 : i32
    return %arg0, %c0_i32 : i32, i32
  }
  func.func @transform_1(%arg0: i32) -> (i32, i32) {
    %c0_i32 = arith.constant 0 : i32
    %c0_i32_0 = arith.constant 0 : i32
    return %arg0, %c0_i32 : i32, i32
  }
}

</mosaic_0001>

<bundles_post_ra>
// kernel: tpu_custom_call.1
= control target key start
LH: loop header
LB: loop body
LE: loop exit
PB: predicated region body
PF: predicated region fallthrough
CT: control target
= control target key end

     0   :  { %s240_s10 = smov 1   ;;  %s241_s11 = smov 127   ;;  %vm45_vm0 = vcmask 121856   ;;  %vm28_vm1 = vcmask 7168   ;;  %v66_v6 = vlaneseq  ;;  %vm131_vm2 = vcmask 1040384   ;;  %s350_s0 = inlined_call_operand.vmem [shape: f32[32,16], index: 0, kind: input, shape index: {}]   ;;  %s351_s1 = inlined_call_operand.vmem [shape: f32[32,16], index: 1, kind: output, shape index: {}]  }
   0x1   :  { %v10_v0 = vld [vmem:[%s350_s0 + $0x10] sm:$0xff]  ;;  %v8_v1 = vld [vmem:[%s350_s0] sm:$0xff]  ;;  %v11_v2 = vld [vmem:[%s350_s0 + $0x18] sm:$0xff]  ;;  %vm148_vm4 = vcmask 1046528   ;;  %vm229_vm5 = vcmask 130048  }
   0x2   :  { %20 = vrot.lane.b32.xlu1 %v10_v0, %s240_s10  ;;  %16 = vrot.lane.b32.xlu0 %v8_v1, %s240_s10  ;;  %v9_v3 = vld [vmem:[%s350_s0 + $0x8] sm:$0xff]  ;;  %v58_v7 = vadd.f32 %v8_v1, %v8_v1  ;;  %v67_v12 = vshrl.u32 %v66_v6, 7  ;;  %v60_v28 = vadd.f32 %v10_v0, %v10_v0  ;;  %v61_v31 = vadd.f32 %v11_v2, %v11_v2 }
   0x3   :  { %33 = vrot.lane.b32.xlu2 %v8_v1, %s241_s11  ;;  %v59_v20 = vadd.f32 %v9_v3, %v9_v3 }
   0x4   :  { %v70_v16 = vadd.s32 24, %v67_v12  ;;  %v75_v17 = vand.u32 15, %v67_v12  ;;  %v68_v26 = vadd.s32 8, %v67_v12  ;;  %v69_v27 = vadd.s32 16, %v67_v12 }
   0x6   :  { %v96_v25 = vand.u32 15, %v70_v16  ;;  %vm271_vm3 = vcmp.eq.s32.totalorder %v75_v17, 0  ;;  %v82_v40 = vand.u32 15, %v68_v26  ;;  %v89_v41 = vand.u32 15, %v69_v27 }
   0x8   :  { %vm282_vm6 = vcmp.eq.s32.totalorder %v96_v25, 15  ;;  %vm301_vm7 = vcmp.eq.s32.totalorder %v89_v41, 0  ;;  %vm305_vm8 = vcmp.eq.s32.totalorder %v82_v40, 15 }
   0xa   :  { %22 = vrot.lane.b32.xlu1 %v11_v2, %s240_s10  ;;  %18 = vrot.lane.b32.xlu0 %v9_v3, %s240_s10 }
   0xb   :  { %35 = vrot.lane.b32.xlu2 %v9_v3, %s241_s11 }
  0x12   :  { %39 = vrot.lane.b32.xlu1 %v11_v2, %s241_s11  ;;  %37 = vrot.lane.b32.xlu0 %v10_v0, %s241_s11 }
  0x5d   :  { %v34_v4 = vpop.permute.xlu2 %33 }
  0x5e   :  { %v46_v5 = vsel %vm45_vm0, %v34_v4, 0.0 }
  0x65   :  { %v36_v15 = vpop.permute.xlu2 %35 }
  0x66   :  { %v47_v19 = vsel %vm45_vm0, %v36_v15, 0.0 }
  0x74   :  { %v21_v8 = vpop.permute.xlu1 %20  ;;  %v17_v9 = vpop.permute.xlu0 %16 }
  0x75   :  { %v29_v10 = vsel %vm28_vm1, 0.0, %v17_v9  ;;  %v31_v46 = vsel %vm28_vm1, 0.0, %v21_v8 }
  0x76   :  { %v54_v11 = vadd.f32 %v46_v5, %v29_v10  ;;  %v266_v13 = vsub.f32 %v46_v5, %v29_v10 }
  0x78   :  { %v62_v14 = vadd.f32 %v58_v7, %v54_v11  ;;  %v132_v18 = vrot.slane %v266_v13, 7  ;;  %v149_v34 = vrot.slane %v266_v13, 1  ;;  %v205_v48 = vadd.f32 %v266_v13, %v266_v13 }
  0x7a   :  { %v169_v21 = vrot.slane %v62_v14, 7  ;;  %v143_v33 = vsel %vm131_vm2, 0.0, %v132_v18  ;;  %v185_v38 = vrot.slane %v62_v14, 1 }
  0x7b   :  { %v144_v42 = vsel %vm271_vm3, 0.0, %v143_v33 }
  0x7c   :  { %v23_v22 = vpop.permute.xlu1 %22  ;;  %v19_v23 = vpop.permute.xlu0 %18  ;;  %v180_v35 = vsel %vm131_vm2, 0.0, %v169_v21 }
  0x7d   :  { %v30_v24 = vsel %vm28_vm1, 0.0, %v19_v23  ;;  %v181_v47 = vsel %vm271_vm3, 0.0, %v180_v35  ;;  %v32_v50 = vsel %vm28_vm1, 0.0, %v23_v22 }
  0x7e   :  { %v51_v29 = vsub.f32 %v47_v19, %v30_v24  ;;  %v55_v30 = vadd.f32 %v47_v19, %v30_v24 }
  0x80   :  { %v280_v36 = vadd.f32 %v59_v20, %v55_v30  ;;  %v150_v37 = vrot.slane %v51_v29, 1  ;;  %v133_v51 = vrot.slane %v51_v29, 7  ;;  %v206_v4 = vadd.f32 %v51_v29, %v51_v29 }
  0x82   :  { %v151_v43 = vsel %vm148_vm4, %v149_v34, %v150_v37  ;;  %v170_v44 = vrot.slane %v280_v36, 7  ;;  %v186_v45 = vrot.slane %v280_v36, 1  ;;  %v134_v12 = vsel %vm131_vm2, %v132_v18, %v133_v51 }
  0x83   :  { %v201_v49 = vadd.f32 %v151_v43, %v144_v42 }
  0x84   :  { %v171_v52 = vsel %vm131_vm2, %v169_v21, %v170_v44  ;;  %v187_v53 = vsel %vm148_vm4, %v185_v38, %v186_v45  ;;  %v40_v54 = vpop.permute.xlu1 %39  ;;  %v38_v55 = vpop.permute.xlu0 %37 }
  0x85   :  { %v209_v56 = vadd.f32 %v205_v48, %v201_v49  ;;  %v213_v57 = vsub.f32 %v181_v47, %v187_v53  ;;  %v49_v58 = vsel %vm45_vm0, %v40_v54, 0.0  ;;  %v48_v59 = vsel %vm45_vm0, %v38_v55, 0.0 }
  0x86   :  { %v53_v60 = vsub.f32 %v49_v58, %v32_v50  ;;  %v57_v61 = vadd.f32 %v49_v58, %v32_v50  ;;  %v52_v62 = vsub.f32 %v48_v59, %v31_v46  ;;  %v56_v63 = vadd.f32 %v48_v59, %v31_v46 }
  0x87   :  { %v217_v0 = vand.u32 2147483647, %v209_v56  ;;  %v221_v1 = vand.u32 2147483647, %v213_v57 }
  0x88   :  { %v65_v5 = vadd.f32 %v61_v31, %v57_v61  ;;  %v137_v6 = vrot.slane %v53_v60, 7  ;;  %v154_v7 = vrot.slane %v53_v60, 1  ;;  %v64_v9 = vadd.f32 %v60_v28, %v56_v63 }
  0x89   :  { %v225_v8 = vadd.f32 %v221_v1, %v217_v0  ;;  %v135_v10 = vrot.slane %v52_v62, 7  ;;  %v152_v11 = vrot.slane %v52_v62, 1  ;;  %v208_v24 = vadd.f32 %v53_v60, %v53_v60 }
  0x8a   :  { %v160_v14 = vsel %vm148_vm4, %v154_v7, 0.0  ;;  %v174_v15 = vrot.slane %v65_v5, 7  ;;  %v190_v16 = vrot.slane %v65_v5, 1  ;;  %v172_v25 = vrot.slane %v64_v9, 7 }
  0x8b   :  { %230 = vst.msk [vmem:[%s351_s1] sm:$0xff] %vm229_vm5, %v225_v8  ;;  %v164_v17 = vsel %vm282_vm6, 0.0, %v160_v14  ;;  %v136_v19 = vsel %vm131_vm2, %v133_v51, %v135_v10  ;;  %v138_v20 = vsel %vm131_vm2, %v135_v10, %v137_v6  ;;  %v153_v13 = vsel %vm148_vm4, %v150_v37, %v152_v11 }
  0x8c   :  { %v196_v18 = vsel %vm148_vm4, %v190_v16, 0.0  ;;  %v146_v21 = vsel %vm301_vm7, 0.0, %v136_v19  ;;  %v155_v22 = vsel %vm148_vm4, %v152_v11, %v154_v7  ;;  %v162_v23 = vsel %vm305_vm8, 0.0, %v153_v13 }
  0x8d   :  { %v188_v26 = vrot.slane %v64_v9, 1  ;;  %v202_v27 = vadd.f32 %v162_v23, %v134_v12  ;;  %v200_v28 = vsel %vm282_vm6, 0.0, %v196_v18  ;;  %v203_v29 = vadd.f32 %v155_v22, %v146_v21 }
  0x8e   :  { %v204_v30 = vadd.f32 %v164_v17, %v138_v20  ;;  %v207_v31 = vadd.f32 %v52_v62, %v52_v62  ;;  %v173_v32 = vsel %vm131_vm2, %v170_v44, %v172_v25  ;;  %v175_v33 = vsel %vm131_vm2, %v172_v25, %v174_v15 }
  0x8f   :  { %v189_v34 = vsel %vm148_vm4, %v186_v45, %v188_v26  ;;  %v191_v35 = vsel %vm148_vm4, %v188_v26, %v190_v16  ;;  %v183_v36 = vsel %vm301_vm7, 0.0, %v173_v32  ;;  %v210_v38 = vadd.f32 %v206_v4, %v202_v27 }
  0x90   :  { %v198_v37 = vsel %vm305_vm8, 0.0, %v189_v34  ;;  %v211_v39 = vadd.f32 %v207_v31, %v203_v29  ;;  %v212_v40 = vadd.f32 %v208_v24, %v204_v30  ;;  %v215_v42 = vsub.f32 %v183_v36, %v191_v35 }
  0x91   :  { %v214_v41 = vsub.f32 %v171_v52, %v198_v37  ;;  %v216_v43 = vsub.f32 %v175_v33, %v200_v28  ;;  %v218_v46 = vand.u32 2147483647, %v210_v38 }
  0x92   :  { %v219_v44 = vand.u32 2147483647, %v211_v39  ;;  %v220_v47 = vand.u32 2147483647, %v212_v40  ;;  %v223_v49 = vand.u32 2147483647, %v215_v42 }
  0x93   :  { %v222_v48 = vand.u32 2147483647, %v214_v41  ;;  %v224_v45 = vand.u32 2147483647, %v216_v43 }
  0x94   :  { %v227_v51 = vadd.f32 %v223_v49, %v219_v44 }
  0x95   :  { %v226_v50 = vadd.f32 %v222_v48, %v218_v46  ;;  %v228_v53 = vadd.f32 %v224_v45, %v220_v47 }
  0x96   :  { %232 = vst.msk [vmem:[%s351_s1 + $0x10] sm:$0xff] %vm229_vm5, %v227_v51 }
  0x97   :  { %231 = vst.msk [vmem:[%s351_s1 + $0x8] sm:$0xff] %vm229_vm5, %v226_v50 }
  0x98   :  { %233 = vst.msk [vmem:[%s351_s1 + $0x18] sm:$0xff] %vm229_vm5, %v228_v53 }

</bundles_post_ra>
